<compile_context>
chip_gen: v7x
topology: tpu7x:2x2x1
jax: 0.10.0
libtpu: 0.0.40
codegen_flags: <defaults>
</compile_context>

<pallas_src>
from functools import partial

import jax
import jax.numpy as jnp
from jax import lax
from jax.experimental import pallas as pl
from jax.experimental.pallas import tpu as pltpu


def _pointwise_conv(w, x):
    """1x1 conv: (Co, Ci) @ (Ci, L) -> (Co, L), f32 accumulate.

    Small Ci: Ci broadcast-FMAs on the VPU (full lane-dense vregs, f32).
    Large Ci: MXU matmul with native operand dtypes (bf16 at production
              sizes) and f32 accumulation via preferred_element_type.
    """
    co, ci = w.shape
    if ci > 16:
        return jnp.dot(w, x, preferred_element_type=jnp.float32)
    wf = w.astype(jnp.float32)
    xf = x.astype(jnp.float32)
    acc = wf[:, 0:1] * xf[0:1, :]
    for c in range(1, ci):
        acc = acc + wf[:, c:c + 1] * xf[c:c + 1, :]
    return acc


def sppf_kernel(x_ref, w1_ref, w2_ref, mask_ref, o_ref, *, shifts):
    # x_ref   : (Cin, L)   one batch element, L = padded H*W (lane-dense)
    # w1_ref  : (Cmid, Cin)
    # w2_ref  : (Cout, 4*Cmid)
    # mask_ref: (8, L)     f32 {0, -inf} boundary masks (precomputed)
    # o_ref   : (Cout, L)
    # shifts  : 8 static lane-roll amounts matching mask rows
    L = x_ref.shape[-1]
    cmid = w1_ref.shape[0]

    # --- 1x1 conv #1: z = w1 @ x --------------------------------------------
    z = _pointwise_conv(w1_ref[...], x_ref[...])            # (Cmid, L) f32

    # --- precomputed boundary masks, broadcast ONCE per mask (hoisted) ------
    mask_all = mask_ref[...]                                 # (8, L) f32
    taps = [(shifts[k], jnp.broadcast_to(mask_all[k:k + 1, :], (cmid, L)))
            for k in range(8)]
    w_taps, h_taps = taps[:4], taps[4:]                      # W-dir, H-dir

    def pool1d(a, tap_list):
        out = a                                              # center tap
        for s, m in tap_list:
            out = jnp.maximum(out, pltpu.roll(a, s, axis=1) + m)
        return out

    def pool5x5(a):               # separable: 5-wide over W, then over H
        return pool1d(pool1d(a, w_taps), h_taps)

    y1 = pool5x5(z)
    y2 = pool5x5(y1)
    y3 = pool5x5(y2)

    # --- 1x1 conv #2 without materializing concat([z, y1, y2, y3]) ----------
    w2 = w2_ref[...]
    acc = _pointwise_conv(w2[:, 0 * cmid:1 * cmid], z)
    acc = acc + _pointwise_conv(w2[:, 1 * cmid:2 * cmid], y1)
    acc = acc + _pointwise_conv(w2[:, 2 * cmid:3 * cmid], y2)
    acc = acc + _pointwise_conv(w2[:, 3 * cmid:4 * cmid], y3)
    o_ref[...] = acc.astype(o_ref.dtype)


def sppf_forward(x_nchw, w_conv, w_proj):
    """x_nchw: (N, Cin, H, W); w_conv: (Cmid, Cin, 1, 1); w_proj: (Cout, 4*Cmid, 1, 1)."""
    N, Cin, H, W = x_nchw.shape
    Cmid = w_conv.shape[0]
    Cout = w_proj.shape[0]
    L = H * W
    # Keep the output block lane-dense (unmasked stores): pad L to a
    # multiple of 128.  No-op at 16x16 (L=256).
    L_pad = max(128, -(-L // 128) * 128)

    # Free, contiguous reshapes -- no NCHW<->NHWC transpose passes over HBM.
    x_flat = x_nchw.reshape(N, Cin, L)
    if L_pad != L:
        x_flat = jnp.pad(x_flat, ((0, 0), (0, 0), (0, L_pad - L)))
    w1 = w_conv.reshape(Cmid, Cin)
    w2 = w_proj.reshape(Cout, 4 * Cmid)

    # ---- precompute the 8 pooling taps: roll shift + {0,-inf} range mask ---
    # pltpu.roll follows jnp.roll semantics: rolled[i] = a[(i - shift) % L],
    # so a tap at spatial offset (dr, dc) (flat offset f = dr*W + dc) uses
    # shift = (-f) % L_pad and is valid iff the neighbor is in-bounds.
    offsets = ((0, -1), (0, 1), (0, -2), (0, 2),    # W-direction taps
               (-1, 0), (1, 0), (-2, 0), (2, 0))    # H-direction taps
    idx = jnp.arange(L_pad, dtype=jnp.int32)
    r_i = idx // W
    c_i = idx % W
    real = idx < L
    shift_list = []
    mask_list = []
    for dr, dc in offsets:
        shift_list.append((-(dr * W + dc)) % L_pad)
        ok = (real
              & (r_i + dr >= 0) & (r_i + dr < H)
              & (c_i + dc >= 0) & (c_i + dc < W))
        mask_list.append(jnp.where(ok, 0.0, -jnp.inf).astype(jnp.float32))
    masks = jnp.stack(mask_list, axis=0)            # (8, L_pad) f32
    shifts = tuple(int(s) for s in shift_list)

    out_flat = pl.pallas_call(
        partial(sppf_kernel, shifts=shifts),
        out_shape=jax.ShapeDtypeStruct((N, Cout, L_pad), x_nchw.dtype),
        grid_spec=pltpu.PrefetchScalarGridSpec(
            num_scalar_prefetch=0,
            # N=2 "parallel" steps: feeds both v7x TensorCores while adding
            # only one extra (~0.35 us) step on single-TC v5e/v6e.
            grid=(N,),
            in_specs=[
                pl.BlockSpec((None, Cin, L_pad), lambda n: (n, 0, 0)),
                pl.BlockSpec((Cmid, Cin), lambda n: (0, 0)),
                pl.BlockSpec((Cout, 4 * Cmid), lambda n: (0, 0)),
                pl.BlockSpec((8, L_pad), lambda n: (0, 0)),
            ],
            out_specs=pl.BlockSpec((None, Cout, L_pad), lambda n: (n, 0, 0)),
        ),
        compiler_params=pltpu.CompilerParams(
            dimension_semantics=("parallel",)),
    )(x_flat, w1, w2, masks)

    return out_flat[:, :, :L].reshape(N, Cout, H, W)


def sppf_reference(x_nchw, w_conv, w_proj):
    """Pure-JAX reference (NCHW, matches PyTorch)."""
    Cmid = w_conv.shape[0]
    Cout = w_proj.shape[0]
    z = jnp.einsum('nchw,oc->nohw', x_nchw, w_conv.reshape(Cmid, -1),
                   precision=lax.Precision.HIGHEST)

    def pool(a):
        return lax.reduce_window(a, -jnp.inf, lax.max,
                                 (1, 1, 5, 5), (1, 1, 1, 1),
                                 padding=((0, 0), (0, 0), (2, 2), (2, 2)))

    y1 = pool(z)
    y2 = pool(y1)
    y3 = pool(y2)
    cat = jnp.concatenate([z, y1, y2, y3], axis=1)
    return jnp.einsum('nchw,oc->nohw', cat, w_proj.reshape(Cout, -1),
                      precision=lax.Precision.HIGHEST)


if __name__ == "__main__":
    key = jax.random.PRNGKey(0)
    k1, k2, k3 = jax.random.split(key, 3)

    N, Cin, H, W = 2, 4, 16, 16          # in_channels=4
    Cout = 8                             # out_channels=8
    Cmid = Cin // 2

    x = jax.random.normal(k1, (N, Cin, H, W), jnp.float32)
    w_conv = jax.random.normal(k2, (Cmid, Cin, 1, 1), jnp.float32) * 0.1
    w_proj = jax.random.normal(k3, (Cout, 4 * Cmid, 1, 1), jnp.float32) * 0.1

    out = sppf_forward(x, w_conv, w_proj)
    out = jax.block_until_ready(out)

    ref = sppf_reference(x, w_conv, w_proj)
    assert out.shape == (N, Cout, H, W), out.shape
    assert jnp.allclose(out, ref, atol=1e-3, rtol=1e-3), \
        float(jnp.max(jnp.abs(out - ref)))

    print("KERNEL_OK")
</pallas_src>

<mosaic_0001>
module attributes {stable_mosaic.version = 11 : i64} {
  func.func @sppf_kernel(%arg0: i32, %arg1: memref<1x4x256xf32, #tpu.memory_space<vmem>>, %arg2: memref<2x4xf32, #tpu.memory_space<vmem>>, %arg3: memref<8x8xf32, #tpu.memory_space<vmem>>, %arg4: memref<8x256xf32, #tpu.memory_space<vmem>>, %arg5: memref<1x8x256xf32, #tpu.memory_space<vmem>>) attributes {dimension_semantics = [#tpu.dimension_semantics<parallel>], iteration_bounds = array<i64: 2>, scalar_prefetch = 0 : i64, scratch_operands = 0 : i64, tpu.core_type = #tpu.core_type<tc>, window_params = [{transform_indices = @transform_0, window_bounds = array<i64: 1, 4, 256>}, {pipeline_mode = #tpu.pipeline_mode<synchronous>, transform_indices = @transform_1, window_bounds = array<i64: 2, 4>}, {pipeline_mode = #tpu.pipeline_mode<synchronous>, transform_indices = @transform_2, window_bounds = array<i64: 8, 8>}, {pipeline_mode = #tpu.pipeline_mode<synchronous>, transform_indices = @transform_3, window_bounds = array<i64: 8, 256>}, {transform_indices = @transform_4, window_bounds = array<i64: 1, 8, 256>}]} {
    %c0 = arith.constant 0 : index
    %c0_0 = arith.constant 0 : index
    %0 = vector.load %arg2[%c0, %c0_0] : memref<2x4xf32, #tpu.memory_space<vmem>>, vector<2x4xf32>
    %c0_1 = arith.constant 0 : index
    %c0_2 = arith.constant 0 : index
    %c0_3 = arith.constant 0 : index
    %1 = vector.load %arg1[%c0_1, %c0_2, %c0_3] : memref<1x4x256xf32, #tpu.memory_space<vmem>>, vector<1x4x256xf32>
    %2 = vector.shape_cast %1 : vector<1x4x256xf32> to vector<4x256xf32>
    %3 = vector.extract_strided_slice %0 {offsets = [0, 0], sizes = [2, 1], strides = [1, 1]} : vector<2x4xf32> to vector<2x1xf32>
    %4 = vector.extract_strided_slice %2 {offsets = [0, 0], sizes = [1, 256], strides = [1, 1]} : vector<4x256xf32> to vector<1x256xf32>
    %5 = vector.broadcast %3 : vector<2x1xf32> to vector<2x256xf32>
    %6 = vector.broadcast %4 : vector<1x256xf32> to vector<2x256xf32>
    %7 = arith.mulf %5, %6 : vector<2x256xf32>
    %8 = vector.extract_strided_slice %0 {offsets = [0, 1], sizes = [2, 1], strides = [1, 1]} : vector<2x4xf32> to vector<2x1xf32>
    %9 = vector.extract_strided_slice %2 {offsets = [1, 0], sizes = [1, 256], strides = [1, 1]} : vector<4x256xf32> to vector<1x256xf32>
    %10 = vector.broadcast %8 : vector<2x1xf32> to vector<2x256xf32>
    %11 = vector.broadcast %9 : vector<1x256xf32> to vector<2x256xf32>
    %12 = arith.mulf %10, %11 : vector<2x256xf32>
    %13 = arith.addf %7, %12 : vector<2x256xf32>
    %14 = vector.extract_strided_slice %0 {offsets = [0, 2], sizes = [2, 1], strides = [1, 1]} : vector<2x4xf32> to vector<2x1xf32>
    %15 = vector.extract_strided_slice %2 {offsets = [2, 0], sizes = [1, 256], strides = [1, 1]} : vector<4x256xf32> to vector<1x256xf32>
    %16 = vector.broadcast %14 : vector<2x1xf32> to vector<2x256xf32>
    %17 = vector.broadcast %15 : vector<1x256xf32> to vector<2x256xf32>
    %18 = arith.mulf %16, %17 : vector<2x256xf32>
    %19 = arith.addf %13, %18 : vector<2x256xf32>
    %20 = vector.extract_strided_slice %0 {offsets = [0, 3], sizes = [2, 1], strides = [1, 1]} : vector<2x4xf32> to vector<2x1xf32>
    %21 = vector.extract_strided_slice %2 {offsets = [3, 0], sizes = [1, 256], strides = [1, 1]} : vector<4x256xf32> to vector<1x256xf32>
    %22 = vector.broadcast %20 : vector<2x1xf32> to vector<2x256xf32>
    %23 = vector.broadcast %21 : vector<1x256xf32> to vector<2x256xf32>
    %24 = arith.mulf %22, %23 : vector<2x256xf32>
    %25 = arith.addf %19, %24 : vector<2x256xf32>
    %c0_4 = arith.constant 0 : index
    %c0_5 = arith.constant 0 : index
    %26 = vector.load %arg4[%c0_4, %c0_5] : memref<8x256xf32, #tpu.memory_space<vmem>>, vector<8x256xf32>
    %27 = vector.extract_strided_slice %26 {offsets = [0, 0], sizes = [1, 256], strides = [1, 1]} : vector<8x256xf32> to vector<1x256xf32>
    %28 = vector.shape_cast %27 : vector<1x256xf32> to vector<1x256xf32>
    %29 = vector.broadcast %28 : vector<1x256xf32> to vector<2x256xf32>
    %30 = vector.extract_strided_slice %26 {offsets = [1, 0], sizes = [1, 256], strides = [1, 1]} : vector<8x256xf32> to vector<1x256xf32>
    %31 = vector.shape_cast %30 : vector<1x256xf32> to vector<1x256xf32>
    %32 = vector.broadcast %31 : vector<1x256xf32> to vector<2x256xf32>
    %33 = vector.extract_strided_slice %26 {offsets = [2, 0], sizes = [1, 256], strides = [1, 1]} : vector<8x256xf32> to vector<1x256xf32>
    %34 = vector.shape_cast %33 : vector<1x256xf32> to vector<1x256xf32>
    %35 = vector.broadcast %34 : vector<1x256xf32> to vector<2x256xf32>
    %36 = vector.extract_strided_slice %26 {offsets = [3, 0], sizes = [1, 256], strides = [1, 1]} : vector<8x256xf32> to vector<1x256xf32>
    %37 = vector.shape_cast %36 : vector<1x256xf32> to vector<1x256xf32>
    %38 = vector.broadcast %37 : vector<1x256xf32> to vector<2x256xf32>
    %39 = vector.extract_strided_slice %26 {offsets = [4, 0], sizes = [1, 256], strides = [1, 1]} : vector<8x256xf32> to vector<1x256xf32>
    %40 = vector.shape_cast %39 : vector<1x256xf32> to vector<1x256xf32>
    %41 = vector.broadcast %40 : vector<1x256xf32> to vector<2x256xf32>
    %42 = vector.extract_strided_slice %26 {offsets = [5, 0], sizes = [1, 256], strides = [1, 1]} : vector<8x256xf32> to vector<1x256xf32>
    %43 = vector.shape_cast %42 : vector<1x256xf32> to vector<1x256xf32>
    %44 = vector.broadcast %43 : vector<1x256xf32> to vector<2x256xf32>
    %45 = vector.extract_strided_slice %26 {offsets = [6, 0], sizes = [1, 256], strides = [1, 1]} : vector<8x256xf32> to vector<1x256xf32>
    %46 = vector.shape_cast %45 : vector<1x256xf32> to vector<1x256xf32>
    %47 = vector.broadcast %46 : vector<1x256xf32> to vector<2x256xf32>
    %48 = vector.extract_strided_slice %26 {offsets = [7, 0], sizes = [1, 256], strides = [1, 1]} : vector<8x256xf32> to vector<1x256xf32>
    %49 = vector.shape_cast %48 : vector<1x256xf32> to vector<1x256xf32>
    %50 = vector.broadcast %49 : vector<1x256xf32> to vector<2x256xf32>
    %c1_i32 = arith.constant 1 : i32
    %51 = tpu.dynamic_rotate %25 by %c1_i32 dim 1 : vector<2x256xf32>, i32 -> vector<2x256xf32>
    %52 = arith.addf %51, %29 : vector<2x256xf32>
    %53 = arith.maximumf %25, %52 : vector<2x256xf32>
    %c255_i32 = arith.constant 255 : i32
    %54 = tpu.dynamic_rotate %25 by %c255_i32 dim 1 : vector<2x256xf32>, i32 -> vector<2x256xf32>
    %55 = arith.addf %54, %32 : vector<2x256xf32>
    %56 = arith.maximumf %53, %55 : vector<2x256xf32>
    %c2_i32 = arith.constant 2 : i32
    %57 = tpu.dynamic_rotate %25 by %c2_i32 dim 1 : vector<2x256xf32>, i32 -> vector<2x256xf32>
    %58 = arith.addf %57, %35 : vector<2x256xf32>
    %59 = arith.maximumf %56, %58 : vector<2x256xf32>
    %c254_i32 = arith.constant 254 : i32
    %60 = tpu.dynamic_rotate %25 by %c254_i32 dim 1 : vector<2x256xf32>, i32 -> vector<2x256xf32>
    %61 = arith.addf %60, %38 : vector<2x256xf32>
    %62 = arith.maximumf %59, %61 : vector<2x256xf32>
    %c16_i32 = arith.constant 16 : i32
    %63 = tpu.dynamic_rotate %62 by %c16_i32 dim 1 : vector<2x256xf32>, i32 -> vector<2x256xf32>
    %64 = arith.addf %63, %41 : vector<2x256xf32>
    %65 = arith.maximumf %62, %64 : vector<2x256xf32>
    %c240_i32 = arith.constant 240 : i32
    %66 = tpu.dynamic_rotate %62 by %c240_i32 dim 1 : vector<2x256xf32>, i32 -> vector<2x256xf32>
    %67 = arith.addf %66, %44 : vector<2x256xf32>
    %68 = arith.maximumf %65, %67 : vector<2x256xf32>
    %c32_i32 = arith.constant 32 : i32
    %69 = tpu.dynamic_rotate %62 by %c32_i32 dim 1 : vector<2x256xf32>, i32 -> vector<2x256xf32>
    %70 = arith.addf %69, %47 : vector<2x256xf32>
    %71 = arith.maximumf %68, %70 : vector<2x256xf32>
    %c224_i32 = arith.constant 224 : i32
    %72 = tpu.dynamic_rotate %62 by %c224_i32 dim 1 : vector<2x256xf32>, i32 -> vector<2x256xf32>
    %73 = arith.addf %72, %50 : vector<2x256xf32>
    %74 = arith.maximumf %71, %73 : vector<2x256xf32>
    %c1_i32_6 = arith.constant 1 : i32
    %75 = tpu.dynamic_rotate %74 by %c1_i32_6 dim 1 : vector<2x256xf32>, i32 -> vector<2x256xf32>
    %76 = arith.addf %75, %29 : vector<2x256xf32>
    %77 = arith.maximumf %74, %76 : vector<2x256xf32>
    %c255_i32_7 = arith.constant 255 : i32
    %78 = tpu.dynamic_rotate %74 by %c255_i32_7 dim 1 : vector<2x256xf32>, i32 -> vector<2x256xf32>
    %79 = arith.addf %78, %32 : vector<2x256xf32>
    %80 = arith.maximumf %77, %79 : vector<2x256xf32>
    %c2_i32_8 = arith.constant 2 : i32
    %81 = tpu.dynamic_rotate %74 by %c2_i32_8 dim 1 : vector<2x256xf32>, i32 -> vector<2x256xf32>
    %82 = arith.addf %81, %35 : vector<2x256xf32>
    %83 = arith.maximumf %80, %82 : vector<2x256xf32>
    %c254_i32_9 = arith.constant 254 : i32
    %84 = tpu.dynamic_rotate %74 by %c254_i32_9 dim 1 : vector<2x256xf32>, i32 -> vector<2x256xf32>
    %85 = arith.addf %84, %38 : vector<2x256xf32>
    %86 = arith.maximumf %83, %85 : vector<2x256xf32>
    %c16_i32_10 = arith.constant 16 : i32
    %87 = tpu.dynamic_rotate %86 by %c16_i32_10 dim 1 : vector<2x256xf32>, i32 -> vector<2x256xf32>
    %88 = arith.addf %87, %41 : vector<2x256xf32>
    %89 = arith.maximumf %86, %88 : vector<2x256xf32>
    %c240_i32_11 = arith.constant 240 : i32
    %90 = tpu.dynamic_rotate %86 by %c240_i32_11 dim 1 : vector<2x256xf32>, i32 -> vector<2x256xf32>
    %91 = arith.addf %90, %44 : vector<2x256xf32>
    %92 = arith.maximumf %89, %91 : vector<2x256xf32>
    %c32_i32_12 = arith.constant 32 : i32
    %93 = tpu.dynamic_rotate %86 by %c32_i32_12 dim 1 : vector<2x256xf32>, i32 -> vector<2x256xf32>
    %94 = arith.addf %93, %47 : vector<2x256xf32>
    %95 = arith.maximumf %92, %94 : vector<2x256xf32>
    %c224_i32_13 = arith.constant 224 : i32
    %96 = tpu.dynamic_rotate %86 by %c224_i32_13 dim 1 : vector<2x256xf32>, i32 -> vector<2x256xf32>
    %97 = arith.addf %96, %50 : vector<2x256xf32>
    %98 = arith.maximumf %95, %97 : vector<2x256xf32>
    %c1_i32_14 = arith.constant 1 : i32
    %99 = tpu.dynamic_rotate %98 by %c1_i32_14 dim 1 : vector<2x256xf32>, i32 -> vector<2x256xf32>
    %100 = arith.addf %99, %29 : vector<2x256xf32>
    %101 = arith.maximumf %98, %100 : vector<2x256xf32>
    %c255_i32_15 = arith.constant 255 : i32
    %102 = tpu.dynamic_rotate %98 by %c255_i32_15 dim 1 : vector<2x256xf32>, i32 -> vector<2x256xf32>
    %103 = arith.addf %102, %32 : vector<2x256xf32>
    %104 = arith.maximumf %101, %103 : vector<2x256xf32>
    %c2_i32_16 = arith.constant 2 : i32
    %105 = tpu.dynamic_rotate %98 by %c2_i32_16 dim 1 : vector<2x256xf32>, i32 -> vector<2x256xf32>
    %106 = arith.addf %105, %35 : vector<2x256xf32>
    %107 = arith.maximumf %104, %106 : vector<2x256xf32>
    %c254_i32_17 = arith.constant 254 : i32
    %108 = tpu.dynamic_rotate %98 by %c254_i32_17 dim 1 : vector<2x256xf32>, i32 -> vector<2x256xf32>
    %109 = arith.addf %108, %38 : vector<2x256xf32>
    %110 = arith.maximumf %107, %109 : vector<2x256xf32>
    %c16_i32_18 = arith.constant 16 : i32
    %111 = tpu.dynamic_rotate %110 by %c16_i32_18 dim 1 : vector<2x256xf32>, i32 -> vector<2x256xf32>
    %112 = arith.addf %111, %41 : vector<2x256xf32>
    %113 = arith.maximumf %110, %112 : vector<2x256xf32>
    %c240_i32_19 = arith.constant 240 : i32
    %114 = tpu.dynamic_rotate %110 by %c240_i32_19 dim 1 : vector<2x256xf32>, i32 -> vector<2x256xf32>
    %115 = arith.addf %114, %44 : vector<2x256xf32>
    %116 = arith.maximumf %113, %115 : vector<2x256xf32>
    %c32_i32_20 = arith.constant 32 : i32
    %117 = tpu.dynamic_rotate %110 by %c32_i32_20 dim 1 : vector<2x256xf32>, i32 -> vector<2x256xf32>
    %118 = arith.addf %117, %47 : vector<2x256xf32>
    %119 = arith.maximumf %116, %118 : vector<2x256xf32>
    %c224_i32_21 = arith.constant 224 : i32
    %120 = tpu.dynamic_rotate %110 by %c224_i32_21 dim 1 : vector<2x256xf32>, i32 -> vector<2x256xf32>
    %121 = arith.addf %120, %50 : vector<2x256xf32>
    %122 = arith.maximumf %119, %121 : vector<2x256xf32>
    %c0_22 = arith.constant 0 : index
    %c0_23 = arith.constant 0 : index
    %123 = vector.load %arg3[%c0_22, %c0_23] : memref<8x8xf32, #tpu.memory_space<vmem>>, vector<8x8xf32>
    %124 = vector.extract_strided_slice %123 {offsets = [0, 0], sizes = [8, 2], strides = [1, 1]} : vector<8x8xf32> to vector<8x2xf32>
    %125 = vector.extract_strided_slice %124 {offsets = [0, 0], sizes = [8, 1], strides = [1, 1]} : vector<8x2xf32> to vector<8x1xf32>
    %126 = vector.extract_strided_slice %25 {offsets = [0, 0], sizes = [1, 256], strides = [1, 1]} : vector<2x256xf32> to vector<1x256xf32>
    %127 = vector.broadcast %125 : vector<8x1xf32> to vector<8x256xf32>
    %128 = vector.broadcast %126 : vector<1x256xf32> to vector<8x256xf32>
    %129 = arith.mulf %127, %128 : vector<8x256xf32>
    %130 = vector.extract_strided_slice %124 {offsets = [0, 1], sizes = [8, 1], strides = [1, 1]} : vector<8x2xf32> to vector<8x1xf32>
    %131 = vector.extract_strided_slice %25 {offsets = [1, 0], sizes = [1, 256], strides = [1, 1]} : vector<2x256xf32> to vector<1x256xf32>
    %132 = vector.broadcast %130 : vector<8x1xf32> to vector<8x256xf32>
    %133 = vector.broadcast %131 : vector<1x256xf32> to vector<8x256xf32>
    %134 = arith.mulf %132, %133 : vector<8x256xf32>
    %135 = arith.addf %129, %134 : vector<8x256xf32>
    %136 = vector.extract_strided_slice %123 {offsets = [0, 2], sizes = [8, 2], strides = [1, 1]} : vector<8x8xf32> to vector<8x2xf32>
    %137 = vector.extract_strided_slice %136 {offsets = [0, 0], sizes = [8, 1], strides = [1, 1]} : vector<8x2xf32> to vector<8x1xf32>
    %138 = vector.extract_strided_slice %74 {offsets = [0, 0], sizes = [1, 256], strides = [1, 1]} : vector<2x256xf32> to vector<1x256xf32>
    %139 = vector.broadcast %137 : vector<8x1xf32> to vector<8x256xf32>
    %140 = vector.broadcast %138 : vector<1x256xf32> to vector<8x256xf32>
    %141 = arith.mulf %139, %140 : vector<8x256xf32>
    %142 = vector.extract_strided_slice %136 {offsets = [0, 1], sizes = [8, 1], strides = [1, 1]} : vector<8x2xf32> to vector<8x1xf32>
    %143 = vector.extract_strided_slice %74 {offsets = [1, 0], sizes = [1, 256], strides = [1, 1]} : vector<2x256xf32> to vector<1x256xf32>
    %144 = vector.broadcast %142 : vector<8x1xf32> to vector<8x256xf32>
    %145 = vector.broadcast %143 : vector<1x256xf32> to vector<8x256xf32>
    %146 = arith.mulf %144, %145 : vector<8x256xf32>
    %147 = arith.addf %141, %146 : vector<8x256xf32>
    %148 = arith.addf %135, %147 : vector<8x256xf32>
    %149 = vector.extract_strided_slice %123 {offsets = [0, 4], sizes = [8, 2], strides = [1, 1]} : vector<8x8xf32> to vector<8x2xf32>
    %150 = vector.extract_strided_slice %149 {offsets = [0, 0], sizes = [8, 1], strides = [1, 1]} : vector<8x2xf32> to vector<8x1xf32>
    %151 = vector.extract_strided_slice %98 {offsets = [0, 0], sizes = [1, 256], strides = [1, 1]} : vector<2x256xf32> to vector<1x256xf32>
    %152 = vector.broadcast %150 : vector<8x1xf32> to vector<8x256xf32>
    %153 = vector.broadcast %151 : vector<1x256xf32> to vector<8x256xf32>
    %154 = arith.mulf %152, %153 : vector<8x256xf32>
    %155 = vector.extract_strided_slice %149 {offsets = [0, 1], sizes = [8, 1], strides = [1, 1]} : vector<8x2xf32> to vector<8x1xf32>
    %156 = vector.extract_strided_slice %98 {offsets = [1, 0], sizes = [1, 256], strides = [1, 1]} : vector<2x256xf32> to vector<1x256xf32>
    %157 = vector.broadcast %155 : vector<8x1xf32> to vector<8x256xf32>
    %158 = vector.broadcast %156 : vector<1x256xf32> to vector<8x256xf32>
    %159 = arith.mulf %157, %158 : vector<8x256xf32>
    %160 = arith.addf %154, %159 : vector<8x256xf32>
    %161 = arith.addf %148, %160 : vector<8x256xf32>
    %162 = vector.extract_strided_slice %123 {offsets = [0, 6], sizes = [8, 2], strides = [1, 1]} : vector<8x8xf32> to vector<8x2xf32>
    %163 = vector.extract_strided_slice %162 {offsets = [0, 0], sizes = [8, 1], strides = [1, 1]} : vector<8x2xf32> to vector<8x1xf32>
    %164 = vector.extract_strided_slice %122 {offsets = [0, 0], sizes = [1, 256], strides = [1, 1]} : vector<2x256xf32> to vector<1x256xf32>
    %165 = vector.broadcast %163 : vector<8x1xf32> to vector<8x256xf32>
    %166 = vector.broadcast %164 : vector<1x256xf32> to vector<8x256xf32>
    %167 = arith.mulf %165, %166 : vector<8x256xf32>
    %168 = vector.extract_strided_slice %162 {offsets = [0, 1], sizes = [8, 1], strides = [1, 1]} : vector<8x2xf32> to vector<8x1xf32>
    %169 = vector.extract_strided_slice %122 {offsets = [1, 0], sizes = [1, 256], strides = [1, 1]} : vector<2x256xf32> to vector<1x256xf32>
    %170 = vector.broadcast %168 : vector<8x1xf32> to vector<8x256xf32>
    %171 = vector.broadcast %169 : vector<1x256xf32> to vector<8x256xf32>
    %172 = arith.mulf %170, %171 : vector<8x256xf32>
    %173 = arith.addf %167, %172 : vector<8x256xf32>
    %174 = arith.addf %161, %173 : vector<8x256xf32>
    %c0_24 = arith.constant 0 : index
    %c0_25 = arith.constant 0 : index
    %c0_26 = arith.constant 0 : index
    %175 = vector.load %arg5[%c0_24, %c0_25, %c0_26] : memref<1x8x256xf32, #tpu.memory_space<vmem>>, vector<1x8x256xf32>
    %176 = vector.shape_cast %175 : vector<1x8x256xf32> to vector<8x256xf32>
    %177 = vector.shape_cast %174 : vector<8x256xf32> to vector<1x8x256xf32>
    tpu.vector_store %arg5[%c0_24, %c0_25, %c0_26], %177 {strides = array<i32>} : memref<1x8x256xf32, #tpu.memory_space<vmem>>, vector<1x8x256xf32>,
    return
  }
  func.func @transform_0(%arg0: i32) -> (i32, i32, i32) {
    %c0_i32 = arith.constant 0 : i32
    %c0_i32_0 = arith.constant 0 : i32
    %c0_i32_1 = arith.constant 0 : i32
    return %arg0, %c0_i32, %c0_i32_0 : i32, i32, i32
  }
  func.func @transform_1(%arg0: i32) -> (i32, i32) {
    %c0_i32 = arith.constant 0 : i32
    %c0_i32_0 = arith.constant 0 : i32
    %c0_i32_1 = arith.constant 0 : i32
    return %c0_i32, %c0_i32_0 : i32, i32
  }
  func.func @transform_2(%arg0: i32) -> (i32, i32) {
    %c0_i32 = arith.constant 0 : i32
    %c0_i32_0 = arith.constant 0 : i32
    %c0_i32_1 = arith.constant 0 : i32
    return %c0_i32, %c0_i32_0 : i32, i32
  }
  func.func @transform_3(%arg0: i32) -> (i32, i32) {
    %c0_i32 = arith.constant 0 : i32
    %c0_i32_0 = arith.constant 0 : i32
    %c0_i32_1 = arith.constant 0 : i32
    return %c0_i32, %c0_i32_0 : i32, i32
  }
  func.func @transform_4(%arg0: i32) -> (i32, i32, i32) {
    %c0_i32 = arith.constant 0 : i32
    %c0_i32_0 = arith.constant 0 : i32
    %c0_i32_1 = arith.constant 0 : i32
    return %arg0, %c0_i32, %c0_i32_0 : i32, i32, i32
  }
}

</mosaic_0001>

<bundles_post_ra>
// kernel: tpu_custom_call.1
= control target key start
LH: loop header
LB: loop body
LE: loop exit
PB: predicated region body
PF: predicated region fallthrough
CT: control target
= control target key end

     0   :  { %9 = vsyncpa [#allocation3], 0  ;;  %s1817_s0 = inlined_call_operand.hbm [shape: f32[2,4,256], index: 0, kind: input, shape index: {}]   ;;  %s1818_s1 = inlined_call_operand.vmem [shape: f32[2,4], index: 1, kind: input, shape index: {}]   ;;  %s1819_s2 = inlined_call_operand.hbm [shape: f32[8,8], index: 2, kind: input, shape index: {}]   ;;  %s1820_s3 = inlined_call_operand.hbm [shape: f32[8,256], index: 3, kind: input, shape index: {}]   ;;  %s1821_s4 = inlined_call_operand.hbm [shape: f32[2,8,256], index: 4, kind: output, shape index: {}]  }
   0x1   :  { %11 = vsyncpa [#allocation3 + $0x1], 0 }
   0x2   :  { %12 = vsyncpa [#allocation6], 0 }
   0x3   :  { %13 = vsyncpa [#allocation4], 0 }
   0x4   :  { %15 = vsyncpa [#allocation4 + $0x1], 0  ;;  %s1212_s15 = smov 0   ;;  %s1214_s16 = smov 0  }
   0x5   :  { %s1216_s17 = smov 0   ;;  %s1218_s18 = smov 0  }
   0x6 LB: > { %s1233_s19 = sadd.s32 4294967295, %s1165_s18   ;;  %s895_s20 = sadd.s32 4294967294, %s1165_s18   ;;  %s1165_s18 = sphi %s1218_s18, %s1841_s18   ;;  %s1161_s17 = sphi %s1216_s17, %s1840_s17   ;;  %s1157_s16 = sphi %s1214_s16, %s1839_s16   ;;  %s1153_s15 = sphi %s1212_s15, %s1838_s15  }
   0x7   : > { %p41_p0 = scmp.ne.s32.totalorder %s1157_s16, %s1153_s15  ;;  %p1822_p1 = scmp.eq.s32.totalorder %s1233_s19, 0 }
   0x8   : > { %p134_p3 = scmp.eq.s32.totalorder %s895_s20, 1  ;;  %p896_p5 = scmp.ge.s32.totalorder %s1165_s18, 1 }
   0x9   : > { %p1242_p4 = por %p1822_p1, %p41_p0  ;;  %p141_p7 = scmp.lt.s32.totalorder %s1165_s18, 3 }
   0xa   : > { %p1247_p6 = por %p134_p3, %p41_p0  ;;  %s1167_s24 = smov [#allocation5]  }
   0xb   : > { %s1825_s21 = scalar_select %p1242_p4, 1, 0 }
   0xc   : > { %s1826_s22 = scalar_select %p1247_p6, 1, 0 }
   0xd   : > { %p1252_p8 = pnand %p896_p5, %p141_p7  ;;  %s157_s25 = sshll.u32 %s1167_s24, 4  ;;  %s158_s25 = int_to_ptr.vmem [resolvable:$true] %s157_s25 }
   0xe   : > { %s1168_s26 = smov [#allocation7]   ;;  %s1268_s29 = sadd.s32 1, %s1165_s18  }
   0xf   : > { %s1827_s23 = scalar_select %p1252_p8, 1, 0 }
  0x10   : > { %p927_p10 = pneg %p1252_p8  ;;  %s168_s27 = sshll.u32 %s1168_s26, 4  ;;  %s1265_s27 = int_to_ptr.vmem [resolvable:$true] %s168_s27 }
  0x11   : > { %s25_s30 = ssub.s32 %s1165_s18, %s1268_s29  ;;  %s1009_s7 = scalar_lea.hbm %s1819_s2, 128 }
  0x12   : > { %p1261_p11 = pnand %p927_p10, %p1822_p1  ;;  %p1010_p12 = scmp.ne.s32.totalorder %s1819_s2, %s1009_s7 }
  0x13   : > { %p1016_p5 = scmp.lt.u32.totalorder %s1009_s7, %s1819_s2 }
  0x14   : > { %p1011_p13 = pneg %p1261_p11 }
  0x16   : > { %p1012_p0 = pnand %p1011_p13, %p1010_p12 }
  0x18   : > { %p1013_p3 = pneg %p1012_p0 }
  0x1a   : > { %p1018_p7 = pnand %p1016_p5, %p1013_p3 }
  0x1c   : > { %1021 = shalt.err (!%p1018_p7)
}
  0x1d   : > { %s1022_s12 = scalar_lea.vmem %s158_s25, 128  ;;  %p1030_p2 = scmp.lt.s32.totalorder %s158_s25, %s158_s25 }
  0x1e   : > { %p1023_p10 = scmp.ne.s32.totalorder %s158_s25, %s1022_s12  ;;  %p1031_p6 = scmp.lt.s32.totalorder %s1022_s12, %s1022_s12 }
  0x20   : > { %p1025_p9 = pnand %p1023_p10, %p1011_p13  ;;  %p1032_p4 = por %p1031_p6, %p1030_p2 }
  0x22   : > { %p1026_p1 = pneg %p1025_p9 }
  0x24   : > { %p1033_p8 = pnand %p1032_p4, %p1026_p1 }
  0x26   : > { %1036 = shalt.err (!%p1033_p8)
}
  0x27   : > { %930 = dma.hbm_to_vmem [thread:$0]  (!%p1261_p11), %s1819_s2, 128, %s158_s25, [#allocation6]  }
  0x28   : > { %s1037_s26 = scalar_lea.hbm %s1820_s3, 256 }
  0x29   : > { %p1038_p9 = scmp.ne.s32.totalorder %s1820_s3, %s1037_s26  ;;  %p1044_p4 = scmp.lt.u32.totalorder %s1037_s26, %s1820_s3 }
  0x2b   : > { %p1040_p2 = pnand %p1038_p9, %p1011_p13 }
  0x2d   : > { %p1041_p1 = pneg %p1040_p2 }
  0x2f   : > { %p1046_p6 = pnand %p1044_p4, %p1041_p1 }
  0x31   : > { %1049 = shalt.err (!%p1046_p6)
}
  0x32   : > { %s1050_s25 = scalar_lea.vmem %s1265_s27, 256  ;;  %p1058_p3 = scmp.lt.s32.totalorder %s1265_s27, %s1265_s27 }
  0x33   : > { %p1051_p8 = scmp.ne.s32.totalorder %s1265_s27, %s1050_s25  ;;  %p1059_p5 = scmp.lt.s32.totalorder %s1050_s25, %s1050_s25 }
  0x35   : > { %p1053_p12 = pnand %p1051_p8, %p1011_p13  ;;  %p1060_p7 = por %p1059_p5, %p1058_p3 }
  0x37   : > { %p1054_p0 = pneg %p1053_p12 }
  0x39   : > { %p1061_p10 = pnand %p1060_p7, %p1054_p0 }
  0x3b   : > { %1064 = shalt.err (!%p1061_p10)
}
  0x3c   : > { %933 = dma.hbm_to_vmem [thread:$0]  (!%p1261_p11), %s1820_s3, 256, %s1265_s27, [#allocation6]  }
  0x3d   : > { %p26_p13 = scmp.eq.s32.totalorder %s25_s30, 0  ;;  %s28_s11 = sadd.s32 1, %s1161_s17 }
  0x3e   : > { %p35_p9 = scmp.ne.s32.totalorder %s1161_s17, %s1157_s16  ;;  %p36_p2 = scmp.eq.s32.totalorder %s1165_s18, 0 }
  0x3f   : > { %s1327_s28 = scalar_select %p26_p13, %s1161_s17, %s28_s11  }
  0x40   : > { %p37_p1 = por %p36_p2, %p35_p9  ;;  %p1829_p4 = scmp.eq.s32.totalorder %s1233_s19, 1 }
  0x41   : > { %p944_p8 = scmp.lt.s32.totalorder %s1165_s18, 2  ;;  %s179_s13 = sand.u32 1, %s1161_s17  }
  0x42   : > { %p1331_p6 = por %p1829_p4, %p35_p9  ;;  %s900_s14 = sshll.u32 %s179_s13, 3 }
  0x43   : > { %s913_s20 = sshll.u32 %s1165_s18, 7  ;;  %s183_s30 = scalar_lea.vmem [#allocation2], %s900_s14 }
  0x44   : > { %s1341_s27 = scalar_lea.hbm %s1817_s0, %s913_s20  ;;  %s191_s5 = sshll.u32 %s183_s30, 4  ;;  %s1343_s5 = int_to_ptr.vmem [resolvable:$true] %s191_s5 }
  0x45   : > { %p1345_p11 = pnand %p944_p8, %p37_p1  ;;  %s180_s7 = scalar_lea.sflag [#allocation3], %s179_s13 }
  0x46   : > { %s1065_s8 = scalar_lea.hbm %s1341_s27, 128  ;;  %s1070_s10 = scalar_lea.hbm %s1817_s0, 256 }
  0x47   : > { %p1066_p12 = scmp.ne.s32.totalorder %s1341_s27, %s1065_s8  ;;  %p1067_p0 = pneg %p1345_p11 }
  0x48   : > { %p1071_p7 = scmp.lt.u32.totalorder %s1341_s27, %s1817_s0  ;;  %p1072_p10 = scmp.lt.u32.totalorder %s1070_s10, %s1065_s8 }
  0x49   : > { %p1068_p3 = pnand %p1067_p0, %p1066_p12  ;;  %p1074_p9 = scmp.lt.u32.totalorder %s1065_s8, %s1341_s27 }
  0x4a   : > { %p1073_p13 = por %p1072_p10, %p1071_p7 }
  0x4b   : > { %p1069_p5 = pneg %p1068_p3 }
  0x4c   : > { %p1075_p2 = por %p1074_p9, %p1073_p13 }
  0x4e   : > { %p1076_p1 = pnand %p1075_p2, %p1069_p5 }
  0x50   : > { %1079 = shalt.err (!%p1076_p1)
}
  0x51   : > { %s1080_s13 = scalar_lea.vmem %s1343_s5, 128  ;;  %s1169_s20 = smov [#allocation2]  }
  0x52   : > { %p1081_p4 = scmp.ne.s32.totalorder %s1343_s5, %s1080_s13  ;;  %s1085_s24 = sshll.u32 %s1169_s20, 4  ;;  %s1086_s24 = int_to_ptr.vmem [resolvable:$false] %s1085_s24 }
  0x53   : > { %s1087_s26 = scalar_lea.vmem %s1086_s24, 256  ;;  %p1088_p3 = scmp.lt.s32.totalorder %s1343_s5, %s1086_s24 }
  0x54   : > { %p1083_p8 = pnand %p1081_p4, %p1067_p0  ;;  %p1089_p7 = scmp.lt.s32.totalorder %s1087_s26, %s1080_s13 }
  0x56   : > { %p1084_p12 = pneg %p1083_p8  ;;  %p1090_p10 = por %p1089_p7, %p1088_p3 }
  0x58   : > { %p1091_p13 = pnand %p1090_p10, %p1084_p12 }
  0x5a   : > { %1094 = shalt.err (!%p1091_p13)
}
  0x5b   : > { %937 = dma.hbm_to_vmem [thread:$0]  (!%p1345_p11), %s1341_s27, 128, %s1343_s5, %s180_s7  }
  0x5c   : > { %p1832_p5 = scmp.ne.s32.totalorder %s1827_s23, 0 }
  0x5d   : > { %s1377_s30 = sand.u32 (!%p1832_p5), 1, %s1157_s16   ;;  %p1833_p0 = scmp.ne.s32.totalorder (!%p1832_p5), %s1825_s21, 0 }
  0x5e   : > { %200 = sbr.rel (%p1832_p5) target bundleno = 1076 (0x434), region = 36  ;;  %s904_s8 = sshll.u32 (!%p1832_p5), %s1377_s30, 3 }
  0x5f   : > { %s203_s25 = scalar_lea.sflag (!%p1832_p5), [#allocation3], %s1377_s30  ;;  %s206_s9 = scalar_lea.vmem (!%p1832_p5), [#allocation2], %s904_s8 }
  0x65   : > { %1140 = dma.done.wait (%p1833_p0), %s203_s25, 128  }
  0x66   : > { %1142 = vsyncadd (%p1833_p0), %s203_s25, 4294967168  ;;  %p1834_p9 = scmp.eq.s32.totalorder %s1233_s19, 0 }
  0x68   : > { %1144 = dma.done.wait (%p1834_p9), [#allocation6], 384   ;;  %p1835_p11 = pmov %p1834_p9 }
  0x69   : > { %v1170_v0 = vmov 0   ;;  %v1171_v1 = vmov 2   ;;  %v239_v2 = vld [vmem:[%s1818_s1] sm:$0x3]  ;;  %v1172_v3 = vmov 1   ;;  %v1173_v4 = vmov 3  }
  0x6a   : > { %1146 = vsyncadd (%p1835_p11), [#allocation6], 4294966912  ;;  %998 = vset.pattern.permute.xlu0 %v1170_v0  ;;  %1000 = vset.pattern.permute.xlu1 %v1171_v1  ;;  %v247_v5 = vlaneseq  ;;  %v240_v11 = vld [vmem:[%s206_s9] sm:$0xff]  ;;  %s1174_s21 = smov 1   ;;  %s1175_s5 = smov 127   ;;  %v1448_v51 = vld [vmem:[#allocation7] sm:$0xff] }
  0x6b   : > { %243 = vperm.xlu0 %998, %v239_v2   ;;  %294 = vperm.xlu1 %1000, %v239_v2   ;;  %s1176_s6 = smov 2   ;;  %s1177_s7 = smov 126   ;;  %v1450_v52 = vld [vmem:[#allocation7 + $0x8] sm:$0xff] }
  0x6c   : > { %v248_v6 = vshrl.u32 %v247_v5, 7  ;;  %v1446_v50 = vand.u32 127, %v247_v5  ;;  %s1178_s10 = smov 16   ;;  %s1179_s11 = smov 112  }
  0x6d   : > { %s1180_s14 = smov 32   ;;  %s1181_s13 = smov 96  }
  0x6e   : > { %v1394_v7 = vsub.s32 0, %v248_v6  ;;  %v1396_v8 = vsub.s32 4, %v248_v6  ;;  %v1398_v9 = vsub.s32 1, %v248_v6  ;;  %v1400_v10 = vsub.s32 5, %v248_v6  ;;  %s907_s20 = sshll.u32 %s1377_s30, 4  ;;  %s914_s24 = sshll.u32 %s1233_s19, 8 }
  0x6f   : > { %999 = vset.pattern.permute.xlu0 %v1172_v3  ;;  %1001 = vset.pattern.permute.xlu1 %v1173_v4  ;;  %v1402_v12 = vsub.s32 2, %v248_v6  ;;  %v1404_v13 = vsub.s32 6, %v248_v6  ;;  %v1406_v14 = vsub.s32 3, %v248_v6  ;;  %v1408_v15 = vsub.s32 7, %v248_v6  ;;  %s238_s26 = scalar_lea.vmem [#allocation8], %s907_s20  ;;  %s1773_s23 = scalar_lea.hbm %s1821_s4, %s914_s24 }
  0x70   : > { %268 = vperm.xlu0 %999, %v239_v2   ;;  %320 = vperm.xlu1 %1001, %v239_v2   ;;  %v250_v16 = vrot.slane %v240_v11, %v1394_v7  ;;  %v254_v17 = vrot.slane %v240_v11, %v1396_v8  ;;  %v274_v18 = vrot.slane %v240_v11, %v1398_v9  ;;  %vm417_vm0 = vcmp.lt.s32.totalorder %v1446_v50, 1  ;;  %s806_s8 = sshll.u32 %s238_s26, 4  ;;  %s792_s19 = scalar_lea.sflag [#allocation4], %s1377_s30  ;;  %s1775_s8 = int_to_ptr.vmem [resolvable:$true] %s806_s8 }
  0x71   : > { %v278_v19 = vrot.slane %v240_v11, %v1400_v10  ;;  %v300_v20 = vrot.slane %v240_v11, %v1402_v12  ;;  %v304_v21 = vrot.slane %v240_v11, %v1404_v13  ;;  %v326_v24 = vrot.slane %v240_v11, %v1406_v14  ;;  %s1095_s27 = scalar_lea.vmem %s1775_s8, 256 }
  0x72   : > { %v330_v25 = vrot.slane %v240_v11, %v1408_v15  ;;  %v260_v26 = vrot.slane %v250_v16, %v1394_v7  ;;  %v264_v27 = vrot.slane %v254_v17, %v1394_v7  ;;  %v284_v28 = vrot.slane %v274_v18, %v1398_v9  ;;  %p1096_p2 = scmp.ne.s32.totalorder %s1775_s8, %s1095_s27 }
  0x73   : > { %v288_v29 = vrot.slane %v278_v19, %v1398_v9  ;;  %v310_v30 = vrot.slane %v300_v20, %v1402_v12  ;;  %v314_v31 = vrot.slane %v304_v21, %v1402_v12  ;;  %v336_v32 = vrot.slane %v326_v24, %v1406_v14 }
  0x74   : > { %1002 = vset.pattern.permute.xlu1 %v1170_v0  ;;  %v340_v33 = vrot.slane %v330_v25, %v1406_v14  ;;  %v1455_v55 = vrot.slane %v1448_v51, %v1394_v7  ;;  %v1459_v56 = vrot.slane %v1450_v52, %v1394_v7  ;;  %vm428_vm1 = vcmp.lt.s32.totalorder %v1446_v50, 127  ;;  %p1097_p1 = pnand %p1096_p2, %p1331_p6 }
  0x75   : > { %v1468_v60 = vrot.slane %v1448_v51, %v1398_v9  ;;  %v1472_v61 = vrot.slane %v1450_v52, %v1398_v9  ;;  %v1480_v2 = vrot.slane %v1448_v51, %v1402_v12  ;;  %v1486_v6 = vrot.slane %v1450_v52, %v1402_v12 }
  0x76   : > { %vm439_vm2 = vcmp.lt.s32.totalorder %v1446_v50, 2  ;;  %v1493_v19 = vrot.slane %v1448_v51, %v1406_v14  ;;  %v1501_v12 = vrot.slane %v1450_v52, %v1406_v14  ;;  %vm450_vm3 = vcmp.lt.s32.totalorder %v1446_v50, 126  ;;  %p1098_p4 = pneg %p1097_p1 }
  0x77   : > { %vm461_vm4 = vcmp.lt.s32.totalorder %v1446_v50, 16  ;;  %vm472_vm5 = vcmp.lt.s32.totalorder %v1446_v50, 112  ;;  %vm483_vm6 = vcmp.lt.s32.totalorder %v1446_v50, 32  ;;  %vm494_vm7 = vcmp.lt.s32.totalorder %v1446_v50, 96 }
  0xea   : > { %v244_v22 = vpop.permute.xlu0 %243  ;;  %v295_v23 = vpop.permute.xlu1 %294 }
  0xeb   : > { %v265_v36 = vmul.f32 %v260_v26, %v244_v22  ;;  %v266_v37 = vmul.f32 %v264_v27, %v244_v22  ;;  %v315_v40 = vmul.f32 %v310_v30, %v295_v23  ;;  %v316_v41 = vmul.f32 %v314_v31, %v295_v23 }
  0xef   : > { %v269_v34 = vpop.permute.xlu0 %268  ;;  %v321_v35 = vpop.permute.xlu1 %320 }
  0xf0   : > { %v289_v38 = vmul.f32 %v284_v28, %v269_v34  ;;  %v290_v39 = vmul.f32 %v288_v29, %v269_v34  ;;  %v341_v44 = vmul.f32 %v336_v32, %v321_v35  ;;  %v342_v45 = vmul.f32 %v340_v33, %v321_v35 }
  0xf2   : > { %v291_v42 = vadd.f32 %v289_v38, %v265_v36  ;;  %v292_v43 = vadd.f32 %v290_v39, %v266_v37  ;;  %v1525_v39 = vrot.slane %v1448_v51, %v1396_v8 }
  0xf4   : > { %v317_v46 = vadd.f32 %v315_v40, %v291_v42  ;;  %v318_v47 = vadd.f32 %v316_v41, %v292_v43  ;;  %v1529_v40 = vrot.slane %v1450_v52, %v1396_v8 }
  0xf6   : > { %v1426_v48 = vadd.f32 %v341_v44, %v317_v46  ;;  %v1428_v49 = vadd.f32 %v342_v45, %v318_v47  ;;  %v1538_v44 = vrot.slane %v1448_v51, %v1400_v10  ;;  %v1542_v45 = vrot.slane %v1450_v52, %v1400_v10 }
  0xf8   : > { %413 = vrot.lane.b32.xlu0 %v1428_v49, %s1174_s21  ;;  %411 = vrot.lane.b32.xlu1 %v1426_v48, %s1174_s21 }
  0xfc   : > { %426 = vrot.lane.b32.xlu0 %v1428_v49, %s1175_s5  ;;  %424 = vrot.lane.b32.xlu1 %v1426_v48, %s1175_s5 }
 0x100   : > { %437 = vrot.lane.b32.xlu0 %v1428_v49, %s1176_s6  ;;  %435 = vrot.lane.b32.xlu1 %v1426_v48, %s1176_s6 }
 0x104   : > { %448 = vrot.lane.b32.xlu0 %v1428_v49, %s1177_s7  ;;  %446 = vrot.lane.b32.xlu1 %v1426_v48, %s1177_s7 }
 0x16a   : > { %v414_v53 = vpop.permute.xlu0 %413  ;;  %v412_v54 = vpop.permute.xlu1 %411 }
 0x16b   : > { %v418_v57 = vsel %vm417_vm0, %v412_v54, %v414_v53  ;;  %v419_v58 = vsel %vm417_vm0, %v414_v53, %v412_v54  ;;  %v1550_v53 = vrot.slane %v1448_v51, %v1404_v13 }
 0x16c   : > { %v420_v3 = vadd.f32 %v419_v58, %v1455_v55  ;;  %v421_v5 = vadd.f32 %v418_v57, %v1459_v56  ;;  %v1556_v58 = vrot.slane %v1450_v52, %v1404_v13  ;;  %v1571_v13 = vrot.slane %v1450_v52, %v1408_v15 }
 0x16e   : > { %v427_v59 = vpop.permute.xlu0 %426  ;;  %v425_v62 = vpop.permute.xlu1 %424  ;;  %v422_v22 = vmax.f32 %v1426_v48, %v420_v3  ;;  %v423_v23 = vmax.f32 %v1428_v49, %v421_v5 }
 0x16f   : > { %v429_v63 = vsel %vm428_vm1, %v425_v62, %v427_v59  ;;  %v430_v0 = vsel %vm428_vm1, %v427_v59, %v425_v62 }
 0x170   : > { %v431_v11 = vadd.f32 %v429_v63, %v1468_v60  ;;  %v432_v16 = vadd.f32 %v430_v0, %v1472_v61  ;;  %v1563_v0 = vrot.slane %v1448_v51, %v1408_v15 }
 0x172   : > { %v438_v17 = vpop.permute.xlu0 %437  ;;  %v436_v18 = vpop.permute.xlu1 %435  ;;  %v433_v26 = vmax.f32 %v422_v22, %v431_v11  ;;  %v434_v27 = vmax.f32 %v423_v23, %v432_v16 }
 0x173   : > { %v440_v20 = vsel %vm439_vm2, %v436_v18, %v438_v17  ;;  %v441_v21 = vsel %vm439_vm2, %v438_v17, %v436_v18 }
 0x174   : > { %v442_v24 = vadd.f32 %v441_v21, %v1480_v2  ;;  %v443_v25 = vadd.f32 %v440_v20, %v1486_v6 }
 0x176   : > { %v449_v28 = vpop.permute.xlu0 %448  ;;  %v447_v29 = vpop.permute.xlu1 %446  ;;  %v444_v31 = vmax.f32 %v433_v26, %v442_v24  ;;  %v445_v32 = vmax.f32 %v434_v27, %v443_v25 }
 0x177   : > { %v451_v30 = vsel %vm450_vm3, %v447_v29, %v449_v28  ;;  %v452_v14 = vsel %vm450_vm3, %v449_v28, %v447_v29 }
 0x178   : > { %v453_v33 = vadd.f32 %v451_v30, %v1493_v19  ;;  %v454_v34 = vadd.f32 %v452_v14, %v1501_v12 }
 0x17a   : > { %v455_v35 = vmax.f32 %v444_v31, %v453_v33  ;;  %v456_v36 = vmax.f32 %v445_v32, %v454_v34 }
 0x17c   : > { %459 = vrot.lane.b32.xlu0 %v456_v36, %s1178_s10  ;;  %457 = vrot.lane.b32.xlu1 %v455_v35, %s1178_s10 }
 0x180   : > { %470 = vrot.lane.b32.xlu0 %v456_v36, %s1179_s11  ;;  %468 = vrot.lane.b32.xlu1 %v455_v35, %s1179_s11 }
 0x184   : > { %481 = vrot.lane.b32.xlu0 %v456_v36, %s1180_s14  ;;  %479 = vrot.lane.b32.xlu1 %v455_v35, %s1180_s14 }
 0x188   : > { %492 = vrot.lane.b32.xlu0 %v456_v36, %s1181_s13  ;;  %490 = vrot.lane.b32.xlu1 %v455_v35, %s1181_s13 }
 0x1ee   : > { %v460_v37 = vpop.permute.xlu0 %459  ;;  %v458_v38 = vpop.permute.xlu1 %457 }
 0x1ef   : > { %v462_v41 = vsel %vm461_vm4, %v458_v38, %v460_v37  ;;  %v463_v42 = vsel %vm461_vm4, %v460_v37, %v458_v38 }
 0x1f0   : > { %v464_v54 = vadd.f32 %v463_v42, %v1525_v39  ;;  %v465_v57 = vadd.f32 %v462_v41, %v1529_v40 }
 0x1f2   : > { %v471_v43 = vpop.permute.xlu0 %470  ;;  %v469_v46 = vpop.permute.xlu1 %468  ;;  %v466_v11 = vmax.f32 %v455_v35, %v464_v54  ;;  %v467_v16 = vmax.f32 %v456_v36, %v465_v57 }
 0x1f3   : > { %v473_v8 = vsel %vm472_vm5, %v469_v46, %v471_v43  ;;  %v474_v47 = vsel %vm472_vm5, %v471_v43, %v469_v46 }
 0x1f4   : > { %v475_v10 = vadd.f32 %v473_v8, %v1538_v44  ;;  %v476_v59 = vadd.f32 %v474_v47, %v1542_v45 }
 0x1f6   : > { %v482_v62 = vpop.permute.xlu0 %481  ;;  %v480_v63 = vpop.permute.xlu1 %479  ;;  %v477_v51 = vmax.f32 %v466_v11, %v475_v10  ;;  %v478_v20 = vmax.f32 %v467_v16, %v476_v59 }
 0x1f7   : > { %v484_v3 = vsel %vm483_vm6, %v480_v63, %v482_v62  ;;  %v485_v5 = vsel %vm483_vm6, %v482_v62, %v480_v63 }
 0x1f8   : > { %v486_v17 = vadd.f32 %v485_v5, %v1550_v53  ;;  %v487_v18 = vadd.f32 %v484_v3, %v1556_v58 }
 0x1fa   : > { %v493_v21 = vpop.permute.xlu0 %492  ;;  %v491_v22 = vpop.permute.xlu1 %490  ;;  %v488_v15 = vmax.f32 %v477_v51, %v486_v17  ;;  %v489_v52 = vmax.f32 %v478_v20, %v487_v18 }
 0x1fb   : > { %v495_v23 = vsel %vm494_vm7, %v491_v22, %v493_v21  ;;  %v496_v24 = vsel %vm494_vm7, %v493_v21, %v491_v22 }
 0x1fc   : > { %v497_v25 = vadd.f32 %v495_v23, %v1563_v0  ;;  %v498_v26 = vadd.f32 %v496_v24, %v1571_v13 }
 0x1fe   : > { %v1582_v27 = vmax.f32 %v488_v15, %v497_v25  ;;  %v1584_v28 = vmax.f32 %v489_v52, %v498_v26 }
 0x200   : > { %503 = vrot.lane.b32.xlu0 %v1584_v28, %s1174_s21  ;;  %501 = vrot.lane.b32.xlu1 %v1582_v27, %s1174_s21 }
 0x204   : > { %513 = vrot.lane.b32.xlu0 %v1584_v28, %s1175_s5  ;;  %511 = vrot.lane.b32.xlu1 %v1582_v27, %s1175_s5 }
 0x208   : > { %523 = vrot.lane.b32.xlu0 %v1584_v28, %s1176_s6  ;;  %521 = vrot.lane.b32.xlu1 %v1582_v27, %s1176_s6 }
 0x20c   : > { %533 = vrot.lane.b32.xlu0 %v1584_v28, %s1177_s7  ;;  %531 = vrot.lane.b32.xlu1 %v1582_v27, %s1177_s7 }
 0x272   : > { %v504_v29 = vpop.permute.xlu0 %503  ;;  %v502_v30 = vpop.permute.xlu1 %501 }
 0x273   : > { %v505_v14 = vsel %vm417_vm0, %v502_v30, %v504_v29  ;;  %v506_v31 = vsel %vm417_vm0, %v504_v29, %v502_v30 }
 0x274   : > { %v507_v36 = vadd.f32 %v506_v31, %v1455_v55  ;;  %v508_v37 = vadd.f32 %v505_v14, %v1459_v56 }
 0x276   : > { %v514_v32 = vpop.permute.xlu0 %513  ;;  %v512_v33 = vpop.permute.xlu1 %511  ;;  %v509_v47 = vmax.f32 %v1582_v27, %v507_v36  ;;  %v510_v54 = vmax.f32 %v1584_v28, %v508_v37 }
 0x277   : > { %v515_v34 = vsel %vm428_vm1, %v512_v33, %v514_v32  ;;  %v516_v35 = vsel %vm428_vm1, %v514_v32, %v512_v33 }
 0x278   : > { %v517_v38 = vadd.f32 %v515_v34, %v1468_v60  ;;  %v518_v41 = vadd.f32 %v516_v35, %v1472_v61 }
 0x27a   : > { %v524_v42 = vpop.permute.xlu0 %523  ;;  %v522_v43 = vpop.permute.xlu1 %521  ;;  %v519_v59 = vmax.f32 %v509_v47, %v517_v38  ;;  %v520_v62 = vmax.f32 %v510_v54, %v518_v41 }
 0x27b   : > { %v525_v46 = vsel %vm439_vm2, %v522_v43, %v524_v42  ;;  %v526_v8 = vsel %vm439_vm2, %v524_v42, %v522_v43 }
 0x27c   : > { %v527_v57 = vadd.f32 %v526_v8, %v1480_v2  ;;  %v528_v10 = vadd.f32 %v525_v46, %v1486_v6 }
 0x27e   : > { %v534_v63 = vpop.permute.xlu0 %533  ;;  %v532_v3 = vpop.permute.xlu1 %531  ;;  %v529_v16 = vmax.f32 %v519_v59, %v527_v57  ;;  %v530_v17 = vmax.f32 %v520_v62, %v528_v10 }
 0x27f   : > { %v535_v5 = vsel %vm450_vm3, %v532_v3, %v534_v63  ;;  %v536_v11 = vsel %vm450_vm3, %v534_v63, %v532_v3 }
 0x280   : > { %v537_v18 = vadd.f32 %v535_v5, %v1493_v19  ;;  %v538_v51 = vadd.f32 %v536_v11, %v1501_v12  ;;  %v661_v11 = vld [vmem:[#allocation5] sm:$0xff] }
 0x282   : > { %v539_v20 = vmax.f32 %v529_v16, %v537_v18  ;;  %v540_v21 = vmax.f32 %v530_v17, %v538_v51  ;;  %v1182_v16 = vmov 4   ;;  %v1183_v17 = vmov 5  }
 0x283   : > { %v1184_v18 = vmov 7   ;;  %v1185_v51 = vmov 6  }
 0x284   : > { %543 = vrot.lane.b32.xlu0 %v540_v21, %s1178_s10  ;;  %541 = vrot.lane.b32.xlu1 %v539_v20, %s1178_s10 }
 0x288   : > { %553 = vrot.lane.b32.xlu0 %v540_v21, %s1179_s11  ;;  %551 = vrot.lane.b32.xlu1 %v539_v20, %s1179_s11 }
 0x28c   : > { %563 = vrot.lane.b32.xlu0 %v540_v21, %s1180_s14  ;;  %561 = vrot.lane.b32.xlu1 %v539_v20, %s1180_s14 }
 0x290   : > { %573 = vrot.lane.b32.xlu0 %v540_v21, %s1181_s13  ;;  %571 = vrot.lane.b32.xlu1 %v539_v20, %s1181_s13 }
 0x2f6   : > { %v544_v22 = vpop.permute.xlu0 %543  ;;  %v542_v23 = vpop.permute.xlu1 %541 }
 0x2f7   : > { %v545_v24 = vsel %vm461_vm4, %v542_v23, %v544_v22  ;;  %v546_v15 = vsel %vm461_vm4, %v544_v22, %v542_v23 }
 0x2f8   : > { %v547_v30 = vadd.f32 %v546_v15, %v1525_v39  ;;  %v548_v14 = vadd.f32 %v545_v24, %v1529_v40 }
 0x2fa   : > { %v554_v52 = vpop.permute.xlu0 %553  ;;  %v552_v25 = vpop.permute.xlu1 %551  ;;  %v549_v37 = vmax.f32 %v539_v20, %v547_v30  ;;  %v550_v38 = vmax.f32 %v540_v21, %v548_v14 }
 0x2fb   : > { %v555_v26 = vsel %vm472_vm5, %v552_v25, %v554_v52  ;;  %v556_v29 = vsel %vm472_vm5, %v554_v52, %v552_v25 }
 0x2fc   : > { %v557_v31 = vadd.f32 %v555_v26, %v1538_v44  ;;  %v558_v32 = vadd.f32 %v556_v29, %v1542_v45 }
 0x2fe   : > { %v564_v33 = vpop.permute.xlu0 %563  ;;  %v562_v34 = vpop.permute.xlu1 %561  ;;  %v559_v43 = vmax.f32 %v549_v37, %v557_v31  ;;  %v560_v46 = vmax.f32 %v550_v38, %v558_v32 }
 0x2ff   : > { %v565_v35 = vsel %vm483_vm6, %v562_v34, %v564_v33  ;;  %v566_v36 = vsel %vm483_vm6, %v564_v33, %v562_v34 }
 0x300   : > { %v567_v41 = vadd.f32 %v566_v36, %v1550_v53  ;;  %v568_v42 = vadd.f32 %v565_v35, %v1556_v58 }
 0x302   : > { %v574_v8 = vpop.permute.xlu0 %573  ;;  %v572_v47 = vpop.permute.xlu1 %571  ;;  %v569_v10 = vmax.f32 %v559_v43, %v567_v41  ;;  %v570_v59 = vmax.f32 %v560_v46, %v568_v42 }
 0x303   : > { %v575_v54 = vsel %vm494_vm7, %v572_v47, %v574_v8  ;;  %v576_v57 = vsel %vm494_vm7, %v574_v8, %v572_v47 }
 0x304   : > { %v577_v62 = vadd.f32 %v575_v54, %v1563_v0  ;;  %v578_v63 = vadd.f32 %v576_v57, %v1571_v13 }
 0x306   : > { %v1660_v3 = vmax.f32 %v569_v10, %v577_v62  ;;  %v1662_v5 = vmax.f32 %v570_v59, %v578_v63 }
 0x308   : > { %583 = vrot.lane.b32.xlu0 %v1662_v5, %s1174_s21  ;;  %581 = vrot.lane.b32.xlu1 %v1660_v3, %s1174_s21  ;;  %s1186_s21 = smov [#allocation8]  }
 0x30c   : > { %593 = vrot.lane.b32.xlu0 %v1662_v5, %s1175_s5  ;;  %591 = vrot.lane.b32.xlu1 %v1660_v3, %s1175_s5  ;;  %s1099_s5 = sshll.u32 %s1186_s21, 4  ;;  %s1100_s5 = int_to_ptr.vmem [resolvable:$false] %s1099_s5 }
 0x30d   : > { %p1102_p8 = scmp.lt.s32.totalorder %s1775_s8, %s1100_s5 }
 0x310   : > { %603 = vrot.lane.b32.xlu0 %v1662_v5, %s1176_s6  ;;  %601 = vrot.lane.b32.xlu1 %v1660_v3, %s1176_s6  ;;  %s1101_s6 = scalar_lea.vmem %s1100_s5, 512 }
 0x311   : > { %p1103_p12 = scmp.lt.s32.totalorder %s1101_s6, %s1095_s27 }
 0x313   : > { %p1104_p3 = por %p1103_p12, %p1102_p8 }
 0x314   : > { %613 = vrot.lane.b32.xlu0 %v1662_v5, %s1177_s7  ;;  %611 = vrot.lane.b32.xlu1 %v1660_v3, %s1177_s7 }
 0x315   : > { %p1105_p7 = pnand %p1104_p3, %p1098_p4 }
 0x318   : > { %678 = vperm.xlu0 %999, %v661_v11   ;;  %664 = vperm.xlu1 %1002, %v661_v11  }
 0x31c   : > { %1004 = vset.pattern.permute.xlu0 %v1173_v4  ;;  %1003 = vset.pattern.permute.xlu1 %v1171_v1 }
 0x31d   : > { %708 = vperm.xlu0 %1004, %v661_v11   ;;  %694 = vperm.xlu1 %1003, %v661_v11  }
 0x321   : > { %1005 = vset.pattern.permute.xlu0 %v1182_v16  ;;  %1006 = vset.pattern.permute.xlu1 %v1183_v17 }
 0x322   : > { %726 = vperm.xlu0 %1005, %v661_v11   ;;  %740 = vperm.xlu1 %1006, %v661_v11  }
 0x326   : > { %1008 = vset.pattern.permute.xlu0 %v1184_v18  ;;  %1007 = vset.pattern.permute.xlu1 %v1185_v51 }
 0x37a   : > { %v584_v20 = vpop.permute.xlu0 %583  ;;  %v582_v21 = vpop.permute.xlu1 %581 }
 0x37b   : > { %v585_v22 = vsel %vm417_vm0, %v582_v21, %v584_v20  ;;  %v586_v1 = vsel %vm417_vm0, %v584_v20, %v582_v21  ;;  %v684_v20 = vrot.slane %v1426_v48, %v1398_v9 }
 0x37c   : > { %v587_v52 = vadd.f32 %v586_v1, %v1455_v55  ;;  %v588_v25 = vadd.f32 %v585_v22, %v1459_v56  ;;  %v674_v1 = vrot.slane %v1428_v49, %v1394_v7 }
 0x37e   : > { %v594_v4 = vpop.permute.xlu0 %593  ;;  %v592_v23 = vpop.permute.xlu1 %591  ;;  %v589_v33 = vmax.f32 %v1660_v3, %v587_v52  ;;  %v590_v34 = vmax.f32 %v1662_v5, %v588_v25  ;;  %v718_v52 = vrot.slane %v1584_v28, %v1398_v9  ;;  %v714_v25 = vrot.slane %v1582_v27, %v1398_v9 }
 0x37f   : > { %v595_v24 = vsel %vm428_vm1, %v592_v23, %v594_v4  ;;  %v596_v15 = vsel %vm428_vm1, %v594_v4, %v592_v23  ;;  %v670_v4 = vrot.slane %v1426_v48, %v1394_v7  ;;  %v704_v48 = vrot.slane %v1584_v28, %v1394_v7 }
 0x380   : > { %v597_v26 = vadd.f32 %v595_v24, %v1468_v60  ;;  %v598_v29 = vadd.f32 %v596_v15, %v1472_v61 }
 0x382   : > { %v604_v30 = vpop.permute.xlu0 %603  ;;  %v602_v14 = vpop.permute.xlu1 %601  ;;  %v599_v35 = vmax.f32 %v589_v33, %v597_v26  ;;  %v600_v60 = vmax.f32 %v590_v34, %v598_v29 }
 0x383   : > { %v605_v31 = vsel %vm439_vm2, %v602_v14, %v604_v30  ;;  %v606_v32 = vsel %vm439_vm2, %v604_v30, %v602_v14  ;;  %v732_v14 = vrot.slane %v1660_v3, %v1394_v7 }
 0x384   : > { %v607_v55 = vadd.f32 %v606_v32, %v1480_v2  ;;  %v608_v56 = vadd.f32 %v605_v31, %v1486_v6  ;;  %v736_v31 = vrot.slane %v1662_v5, %v1394_v7 }
 0x386   : > { %v614_v36 = vpop.permute.xlu0 %613  ;;  %v612_v61 = vpop.permute.xlu1 %611  ;;  %v609_v41 = vmax.f32 %v599_v35, %v607_v55  ;;  %v610_v42 = vmax.f32 %v600_v60, %v608_v56  ;;  %v750_v56 = vrot.slane %v1662_v5, %v1398_v9  ;;  %v746_v35 = vrot.slane %v1660_v3, %v1398_v9 }
 0x387   : > { %v615_v37 = vsel %vm450_vm3, %v612_v61, %v614_v36  ;;  %v616_v38 = vsel %vm450_vm3, %v614_v36, %v612_v61 }
 0x388   : > { %v617_v43 = vadd.f32 %v615_v37, %v1493_v19  ;;  %v618_v46 = vadd.f32 %v616_v38, %v1501_v12 }
 0x38a   : > { %v619_v8 = vmax.f32 %v609_v41, %v617_v43  ;;  %v620_v2 = vmax.f32 %v610_v42, %v618_v46 }
 0x38c   : > { %623 = vrot.lane.b32.xlu0 %v620_v2, %s1178_s10  ;;  %621 = vrot.lane.b32.xlu1 %v619_v8, %s1178_s10 }
 0x390   : > { %633 = vrot.lane.b32.xlu0 %v620_v2, %s1179_s11  ;;  %631 = vrot.lane.b32.xlu1 %v619_v8, %s1179_s11 }
 0x394   : > { %653 = vrot.lane.b32.xlu0 %v620_v2, %s1181_s13  ;;  %641 = vrot.lane.b32.xlu1 %v619_v8, %s1180_s14 }
 0x397   : > { %v665_v6 = vpop.permute.xlu1 %664  ;;  %v679_v12 = vpop.permute.xlu0 %678 }
 0x398   : > { %772 = vperm.xlu0 %1008, %v661_v11   ;;  %643 = vrot.lane.b32.xlu1 %v620_v2, %s1180_s14  ;;  %v676_v42 = vmul.f32 %v674_v1, %v665_v6 }
 0x39c   : > { %651 = vrot.lane.b32.xlu1 %v619_v8, %s1181_s13  ;;  %v695_v19 = vpop.permute.xlu1 %694  ;;  %v709_v54 = vpop.permute.xlu0 %708 }
 0x39d   : > { %v719_v37 = vmul.f32 %v714_v25, %v709_v54  ;;  %v720_v38 = vmul.f32 %v718_v52, %v709_v54  ;;  %v706_v41 = vmul.f32 %v704_v48, %v695_v19 }
 0x3a0   : > { %758 = vperm.xlu1 %1007, %v661_v11   ;;  %v688_v11 = vrot.slane %v1428_v49, %v1398_v9 }
 0x3a1   : > { %v741_v47 = vpop.permute.xlu1 %740  ;;  %v727_v59 = vpop.permute.xlu0 %726 }
 0x3a2   : > { %v690_v55 = vmul.f32 %v688_v11, %v679_v12  ;;  %v738_v5 = vmul.f32 %v736_v31, %v727_v59 }
 0x3fe   : > { %v622_v57 = vpop.permute.xlu1 %621  ;;  %v624_v63 = vpop.permute.xlu0 %623 }
 0x3ff   : > { %v625_v18 = vsel %vm461_vm4, %v622_v57, %v624_v63  ;;  %v626_v51 = vsel %vm461_vm4, %v624_v63, %v622_v57 }
 0x400   : > { %v627_v23 = vadd.f32 %v626_v51, %v1525_v39  ;;  %v628_v24 = vadd.f32 %v625_v18, %v1529_v40  ;;  %v700_v39 = vrot.slane %v1582_v27, %v1394_v7 }
 0x402   : > { %v632_v10 = vpop.permute.xlu1 %631  ;;  %v634_v17 = vpop.permute.xlu0 %633  ;;  %v629_v33 = vmax.f32 %v619_v8, %v627_v23  ;;  %v630_v34 = vmax.f32 %v620_v2, %v628_v24  ;;  %v737_v8 = vmul.f32 %v732_v14, %v727_v59  ;;  %v751_v2 = vmul.f32 %v746_v35, %v741_v47 }
 0x403   : > { %v635_v21 = vsel %vm472_vm5, %v632_v10, %v634_v17  ;;  %v636_v22 = vsel %vm472_vm5, %v634_v17, %v632_v10 }
 0x404   : > { %v637_v40 = vadd.f32 %v635_v21, %v1538_v44  ;;  %v638_v29 = vadd.f32 %v636_v22, %v1542_v45  ;;  %v689_v45 = vmul.f32 %v684_v20, %v679_v12  ;;  %v752_v12 = vmul.f32 %v750_v56, %v741_v47 }
 0x405   : > { %v753_v63 = vadd.f32 %v751_v2, %v737_v8 }
 0x406   : > { %v642_v62 = vpop.permute.xlu1 %641  ;;  %v654_v30 = vpop.permute.xlu0 %653  ;;  %v639_v60 = vmax.f32 %v629_v33, %v637_v40  ;;  %v640_v36 = vmax.f32 %v630_v34, %v638_v29  ;;  %v754_v54 = vadd.f32 %v752_v12, %v738_v5 }
 0x40a   : > { %v644_v16 = vpop.permute.xlu1 %643 }
 0x40b   : > { %v645_v26 = vsel %vm483_vm6, %v642_v62, %v644_v16  ;;  %v646_v49 = vsel %vm483_vm6, %v644_v16, %v642_v62  ;;  %v722_v62 = vadd.f32 %v720_v38, %v706_v41 }
 0x40c   : > { %v647_v27 = vadd.f32 %v646_v49, %v1550_v53  ;;  %v648_v44 = vadd.f32 %v645_v26, %v1556_v58  ;;  %v705_v53 = vmul.f32 %v700_v39, %v695_v19  ;;  %v675_v58 = vmul.f32 %v670_v4, %v665_v6 }
 0x40e   : > { %v652_v15 = vpop.permute.xlu1 %651  ;;  %v649_v43 = vmax.f32 %v639_v60, %v647_v27  ;;  %v650_v46 = vmax.f32 %v640_v36, %v648_v44  ;;  %v721_v10 = vadd.f32 %v719_v37, %v705_v53 }
 0x40f   : > { %v655_v32 = vsel %vm494_vm7, %v652_v15, %v654_v30  ;;  %v656_v28 = vsel %vm494_vm7, %v654_v30, %v652_v15 }
 0x410   : > { %v657_v61 = vadd.f32 %v655_v32, %v1563_v0  ;;  %v658_v50 = vadd.f32 %v656_v28, %v1571_v13  ;;  %v691_v0 = vadd.f32 %v689_v45, %v675_v58  ;;  %v692_v13 = vadd.f32 %v690_v55, %v676_v42 }
 0x412   : > { %v659_v3 = vmax.f32 %v649_v43, %v657_v61  ;;  %v660_v57 = vmax.f32 %v650_v46, %v658_v50  ;;  %v723_v47 = vadd.f32 %v721_v10, %v691_v0  ;;  %v724_v18 = vadd.f32 %v722_v62, %v692_v13 }
 0x414   : > { %v778_v19 = vrot.slane %v659_v3, %v1398_v9  ;;  %v782_v6 = vrot.slane %v660_v57, %v1398_v9  ;;  %v764_v17 = vrot.slane %v659_v3, %v1394_v7  ;;  %v768_v59 = vrot.slane %v660_v57, %v1394_v7 }
 0x415   : > { %v755_v1 = vadd.f32 %v753_v63, %v723_v47  ;;  %v756_v4 = vadd.f32 %v754_v54, %v724_v18 }
 0x417   : > { %v773_v16 = vpop.permute.xlu0 %772 }
 0x418   : > { %v783_v11 = vmul.f32 %v778_v19, %v773_v16  ;;  %v784_v20 = vmul.f32 %v782_v6, %v773_v16 }
 0x41f   : > { %v759_v51 = vpop.permute.xlu1 %758 }
 0x420   : > { %v769_v21 = vmul.f32 %v764_v17, %v759_v51  ;;  %v770_v22 = vmul.f32 %v768_v59, %v759_v51 }
 0x422   : > { %v785_v23 = vadd.f32 %v783_v11, %v769_v21  ;;  %v786_v9 = vadd.f32 %v784_v20, %v770_v22 }
 0x424   : > { %v787_v24 = vadd.f32 %v785_v23, %v755_v1  ;;  %v788_v15 = vadd.f32 %v786_v9, %v756_v4 }
 0x426   : > { %789 = vst [vmem:[%s238_s26] sm:$0xff] %v787_v24  ;;  %790 = vst [vmem:[%s238_s26 + $0x8] sm:$0xff] %v788_v15 }
 0x427   : > { %1108 = shalt.err (!%p1105_p7)
}
 0x428   : > { %s1109_s30 = scalar_lea.hbm %s1773_s23, 256  ;;  %s1113_s11 = scalar_lea.hbm %s1821_s4, 512 }
 0x429   : > { %p1110_p10 = scmp.ne.s32.totalorder %s1773_s23, %s1109_s30  ;;  %p1114_p0 = scmp.lt.u32.totalorder %s1773_s23, %s1821_s4 }
 0x42a   : > { %p1115_p9 = scmp.lt.u32.totalorder %s1113_s11, %s1109_s30  ;;  %p1117_p2 = scmp.lt.u32.totalorder %s1109_s30, %s1773_s23 }
 0x42b   : > { %p1111_p13 = pnand %p1110_p10, %p1331_p6 }
 0x42c   : > { %p1116_p11 = por %p1115_p9, %p1114_p0 }
 0x42d   : > { %p1112_p5 = pneg %p1111_p13 }
 0x42e   : > { %p1118_p1 = por %p1117_p2, %p1116_p11 }
 0x430   : > { %p1119_p4 = pnand %p1118_p1, %p1112_p5 }
 0x432   : > { %1122 = shalt.err (!%p1119_p4)
}
 0x433   : > { %925 = dma.vmem_to_hbm [thread:$0]  (%p1331_p6), %s1775_s8, 256, %s1773_s23, %s792_s19  }
 0x434 PF: > { %s818_s20 = sand.u32 1, %s1153_s15   ;;  %p1836_p8 = scmp.ne.s32.totalorder %s1826_s22, 0 }
 0x435   : > { %p1837_p12 = scmp.ge.s32.totalorder %s1165_s18, 2  ;;  %s819_s24 = scalar_lea.sflag [#allocation4], %s818_s20 }
 0x437   : > { %p939_p3 = pnand %p1837_p12, %p1836_p8 }
 0x439   : > { %1148 = dma.done.wait (!%p939_p3), %s819_s24, 256  }
 0x43a   : > { %1150 = vsyncadd (!%p939_p3), %s819_s24, 4294967040  ;;  %p18_p7 = scmp.ge.s32.totalorder %s1268_s29, 4   ;;  %s1838_s15 = smov %s1157_s16 }
 0x43b   : > { %s1839_s16 = smov %s1161_s17  ;;  %s1840_s17 = smov %s1327_s28 }
 0x43c   : > { %s1841_s18 = smov %s1268_s29  ;;  %20 = sbr.rel (!%p18_p7) target bundleno = 6 (0x6), region = 89 }
 0x443   :  { %824 = vsyncpa [#allocation3], 1 }
 0x444   :  { %826 = vsyncpa [#allocation3 + $0x1], 1 }
 0x445   :  { %827 = vsyncpa [#allocation6], 1 }
 0x446   :  { %828 = vsyncpa [#allocation4], 1 }
 0x447   :  { %830 = vsyncpa [#allocation4 + $0x1], 1 }

</bundles_post_ra>
